<compile_context>
chip_gen: v7x
topology: tpu7x:2x2x1
jax: 0.10.0
libtpu: 0.0.40
codegen_flags: <defaults>
</compile_context>

<pallas_src>
import functools
import math

import jax
import jax.numpy as jnp
from jax.experimental import pallas as pl
from jax.experimental.pallas import tpu as pltpu


# ---------------------------------------------------------------------------
# helpers
# ---------------------------------------------------------------------------
def _round_up(x, m):
    return (x + m - 1) // m * m


def _choose_block_rows(B, row_bytes, requested=256, vmem_budget=8 << 20):
    """Pick a batch tile: multiple of 8, VMEM-safe (conservative for v7x's
    64 MiB physical / 32 MiB scoped VMEM with double-buffered inputs), and
    leaving >= 2 grid blocks when B permits (megacore sharding on v7x)."""
    tb = max(8, min(requested, vmem_budget // max(row_bytes, 1)))
    tb = max(8, (tb // 8) * 8)
    if B >= 16:
        tb = min(tb, max(8, ((B // 2) // 8) * 8))
    tb = min(tb, _round_up(B, 8))
    return max(8, (tb // 8) * 8)


def _pad_rows(x, rows, value=0.0):
    if rows == 0:
        return x
    pad_width = [(0, rows)] + [(0, 0)] * (x.ndim - 1)
    return jnp.pad(x, pad_width, constant_values=value)


# ---------------------------------------------------------------------------
# Kernel 1 (fused): analytic KL(Normal||Normal), weighted KL, and the
# softmax-normalized profile, all on the same (TB, D) batch tile.
# weight lives in SMEM (shape (1,) f32).
# ---------------------------------------------------------------------------
def _fused_kl_profile_kernel(w_ref, mq_ref, sq_ref, mp_ref, sp_ref,
                             r1_ref, r2_ref, kl_ref, klw_ref, prof_ref):
    mq = mq_ref[...]
    sq = sq_ref[...]
    mp = mp_ref[...]
    sp = sp_ref[...]

    # analytic KL( N(mq, sq) || N(mp, sp) ), elementwise
    var_ratio = (sq / sp) ** 2
    t1 = ((mq - mp) / sp) ** 2
    kl = 0.5 * (var_ratio + t1 - 1.0 - jnp.log(var_ratio))
    kl_ref[...] = kl
    klw_ref[...] = w_ref[0] * kl          # kl_divergence_weighted, fused

    # compute_profile: combine representations, normalize to sum to 1
    combined = r1_ref[...] + r2_ref[...]
    m = jnp.max(combined, axis=-1, keepdims=True)
    e = jnp.exp(combined - m)
    denom = jnp.sum(e, axis=-1, keepdims=True)
    # exact reciprocal: keep the sum-to-1 property at tight tolerance
    prof_ref[...] = e * pl.reciprocal(denom, approx=False)


def fused_kl_and_profile(mq, sq, mp, sp, r1, r2, weight, block_rows=256):
    B, D = mq.shape
    # 6 f32 inputs + 3 f32 outputs per row
    tb = _choose_block_rows(B, row_bytes=9 * D * 4, requested=block_rows)
    Bp = _round_up(B, tb)
    pad = Bp - B

    mq_ = _pad_rows(mq, pad)
    mp_ = _pad_rows(mp, pad)
    r1_ = _pad_rows(r1, pad)
    r2_ = _pad_rows(r2, pad)
    sq_ = _pad_rows(sq, pad, value=1.0)   # avoid log(0)/div-by-0 in pad rows
    sp_ = _pad_rows(sp, pad, value=1.0)

    spec = pl.BlockSpec((tb, D), lambda i: (i, 0))
    smem_spec = pl.BlockSpec(memory_space=pltpu.MemorySpace.SMEM)
    w_arr = jnp.asarray([weight], dtype=jnp.float32)

    out_shape = (jax.ShapeDtypeStruct((Bp, D), jnp.float32),
                 jax.ShapeDtypeStruct((Bp, D), jnp.float32),
                 jax.ShapeDtypeStruct((Bp, D), jnp.float32))

    kl, klw, prof = pl.pallas_call(
        _fused_kl_profile_kernel,
        grid=(Bp // tb,),
        in_specs=[smem_spec, spec, spec, spec, spec, spec, spec],
        out_specs=(spec, spec, spec),
        out_shape=out_shape,
        compiler_params=pltpu.CompilerParams(
            dimension_semantics=("parallel",)),
    )(w_arr, mq_, sq_, mp_, sp_, r1_, r2_)

    if pad:
        kl, klw, prof = kl[:B], klw[:B], prof[:B]
    return kl, klw, prof


# ---------------------------------------------------------------------------
# Kernel 2: Monte-Carlo KL fallback, HalfNormal(sq) || HalfNormal(sp),
# algebraically factored:
#   mean_S(log_q - log_p) = log(sp/sq) + mean_S(x^2) * (1/(2 sp^2) - 1/(2 sq^2))
# The only (TB, S, D)-sized work is x*x + a sublane reduction; logs and
# reciprocals are O(TB, D).
# ---------------------------------------------------------------------------
def _kl_mc_halfnormal_kernel(x_ref, sq_ref, sp_ref, out_ref, *, inv_n_samples):
    x = x_ref[...]                                  # (TB, S_pad, D)
    sq = sq_ref[...]                                # (TB, D)
    sp = sp_ref[...]                                # (TB, D)
    mean_x2 = jnp.sum(x * x, axis=1) * inv_n_samples     # zero-padding is exact
    inv2q = 1.0 / (2.0 * sq * sq)
    inv2p = 1.0 / (2.0 * sp * sp)
    out_ref[...] = (jnp.log(sp) - jnp.log(sq)) + mean_x2 * (inv2p - inv2q)


def kl_divergence_mc_halfnormal(samples, sq, sp, block_rows=64):
    B, S, D = samples.shape
    Sp = _round_up(S, 8)                            # 8-aligned sublane reduction
    row_bytes = (Sp * D + 3 * D) * 4                # samples + sq + sp + out
    tb = _choose_block_rows(B, row_bytes=row_bytes, requested=block_rows)
    Bp = _round_up(B, tb)
    pad_b = Bp - B
    pad_s = Sp - S

    samples_ = samples
    if pad_b or pad_s:
        samples_ = jnp.pad(samples, ((0, pad_b), (0, pad_s), (0, 0)))
    sq_ = _pad_rows(sq, pad_b, value=1.0)
    sp_ = _pad_rows(sp, pad_b, value=1.0)

    x_spec = pl.BlockSpec((tb, Sp, D), lambda i: (i, 0, 0))
    s_spec = pl.BlockSpec((tb, D), lambda i: (i, 0))

    kernel = functools.partial(_kl_mc_halfnormal_kernel,
                               inv_n_samples=1.0 / S)

    out = pl.pallas_call(
        kernel,
        grid=(Bp // tb,),
        in_specs=[x_spec, s_spec, s_spec],
        out_specs=s_spec,
        out_shape=jax.ShapeDtypeStruct((Bp, D), jnp.float32),
        compiler_params=pltpu.CompilerParams(
            dimension_semantics=("parallel",)),
    )(samples_, sq_, sp_)

    return out[:B] if pad_b else out


# ---------------------------------------------------------------------------
# demo / correctness check
# ---------------------------------------------------------------------------
if __name__ == "__main__":
    key = jax.random.PRNGKey(0)
    B, D, S = 16, 128, 100    # batch, features, MC samples (module uses 100)
    WEIGHT = 0.5

    k1, k2, k3, k4, k5, k6, k7 = jax.random.split(key, 7)

    # predicted (q) and prior (p) distribution parameters
    mq = jax.random.normal(k1, (B, D), dtype=jnp.float32)
    mp = jax.random.normal(k2, (B, D), dtype=jnp.float32)
    sq = jax.nn.softplus(jax.random.normal(k3, (B, D), dtype=jnp.float32)) + 1e-3
    sp = jax.nn.softplus(jax.random.normal(k4, (B, D), dtype=jnp.float32)) + 1e-3

    # representations for compute_profile
    r1 = jax.random.normal(k6, (B, D), dtype=jnp.float32)
    r2 = jax.random.normal(k7, (B, D), dtype=jnp.float32)

    # (a)+(b)+(c): fused analytic KL, weighted KL, and profile softmax
    kl_analytic, kl_weighted, profile = fused_kl_and_profile(
        mq, sq, mp, sp, r1, r2, WEIGHT)

    ref_analytic = 0.5 * ((sq / sp) ** 2 + ((mq - mp) / sp) ** 2 - 1.0
                          - jnp.log((sq / sp) ** 2))
    ref_profile = jax.nn.softmax(r1 + r2, axis=-1)

    # (d): Monte-Carlo fallback KL for HalfNormal(sq) || HalfNormal(sp)
    eps = jnp.abs(jax.random.normal(k5, (B, S, D), dtype=jnp.float32))
    samples = sq[:, None, :] * eps                  # HalfNormal rsample
    kl_mc = kl_divergence_mc_halfnormal(samples, sq, sp)

    c = 0.5 * math.log(2.0 / math.pi)
    log_q_ref = c - jnp.log(sq)[:, None, :] - samples ** 2 / (2 * sq ** 2)[:, None, :]
    log_p_ref = c - jnp.log(sp)[:, None, :] - samples ** 2 / (2 * sp ** 2)[:, None, :]
    ref_mc = jnp.mean(log_q_ref - log_p_ref, axis=1)

    jax.block_until_ready((kl_analytic, kl_weighted, profile, kl_mc))

    assert jnp.allclose(kl_analytic, ref_analytic, atol=1e-4, rtol=1e-4)
    assert jnp.allclose(kl_weighted, WEIGHT * ref_analytic, atol=1e-4, rtol=1e-4)
    assert jnp.allclose(profile, ref_profile, atol=1e-5, rtol=1e-5)
    assert jnp.allclose(jnp.sum(profile, axis=-1), 1.0, atol=1e-5)
    assert jnp.allclose(kl_mc, ref_mc, atol=1e-4, rtol=1e-4)

    print("KERNEL_OK")
</pallas_src>

<mosaic_0001>
module attributes {stable_mosaic.version = 11 : i64} {
  func.func @_fused_kl_profile_kernel(%arg0: i32, %arg1: memref<1xf32, #tpu.memory_space<smem>>, %arg2: memref<8x128xf32, #tpu.memory_space<vmem>>, %arg3: memref<8x128xf32, #tpu.memory_space<vmem>>, %arg4: memref<8x128xf32, #tpu.memory_space<vmem>>, %arg5: memref<8x128xf32, #tpu.memory_space<vmem>>, %arg6: memref<8x128xf32, #tpu.memory_space<vmem>>, %arg7: memref<8x128xf32, #tpu.memory_space<vmem>>, %arg8: memref<8x128xf32, #tpu.memory_space<vmem>>, %arg9: memref<8x128xf32, #tpu.memory_space<vmem>>, %arg10: memref<8x128xf32, #tpu.memory_space<vmem>>) attributes {dimension_semantics = [#tpu.dimension_semantics<parallel>], iteration_bounds = array<i64: 2>, scalar_prefetch = 0 : i64, scratch_operands = 0 : i64, tpu.core_type = #tpu.core_type<tc>, window_params = [{transform_indices = @transform_0, window_bounds = array<i64: 1>}, {transform_indices = @transform_1, window_bounds = array<i64: 8, 128>}, {transform_indices = @transform_2, window_bounds = array<i64: 8, 128>}, {transform_indices = @transform_3, window_bounds = array<i64: 8, 128>}, {transform_indices = @transform_4, window_bounds = array<i64: 8, 128>}, {transform_indices = @transform_5, window_bounds = array<i64: 8, 128>}, {transform_indices = @transform_6, window_bounds = array<i64: 8, 128>}, {transform_indices = @transform_7, window_bounds = array<i64: 8, 128>}, {transform_indices = @transform_8, window_bounds = array<i64: 8, 128>}, {transform_indices = @transform_9, window_bounds = array<i64: 8, 128>}]} {
    %c0 = arith.constant 0 : index
    %c0_0 = arith.constant 0 : index
    %0 = vector.load %arg2[%c0, %c0_0] : memref<8x128xf32, #tpu.memory_space<vmem>>, vector<8x128xf32>
    %c0_1 = arith.constant 0 : index
    %c0_2 = arith.constant 0 : index
    %1 = vector.load %arg3[%c0_1, %c0_2] : memref<8x128xf32, #tpu.memory_space<vmem>>, vector<8x128xf32>
    %c0_3 = arith.constant 0 : index
    %c0_4 = arith.constant 0 : index
    %2 = vector.load %arg4[%c0_3, %c0_4] : memref<8x128xf32, #tpu.memory_space<vmem>>, vector<8x128xf32>
    %c0_5 = arith.constant 0 : index
    %c0_6 = arith.constant 0 : index
    %3 = vector.load %arg5[%c0_5, %c0_6] : memref<8x128xf32, #tpu.memory_space<vmem>>, vector<8x128xf32>
    %4 = arith.divf %1, %3 : vector<8x128xf32>
    %5 = arith.mulf %4, %4 : vector<8x128xf32>
    %6 = arith.subf %0, %2 : vector<8x128xf32>
    %7 = arith.divf %6, %3 : vector<8x128xf32>
    %8 = arith.mulf %7, %7 : vector<8x128xf32>
    %9 = arith.addf %5, %8 : vector<8x128xf32>
    %cst = arith.constant 1.000000e+00 : f32
    %10 = vector.broadcast %cst : f32 to vector<8x128xf32>
    %11 = arith.subf %9, %10 : vector<8x128xf32>
    %12 = math.log %5 : vector<8x128xf32>
    %13 = arith.subf %11, %12 : vector<8x128xf32>
    %cst_7 = arith.constant 5.000000e-01 : f32
    %14 = vector.broadcast %cst_7 : f32 to vector<8x128xf32>
    %15 = arith.mulf %14, %13 : vector<8x128xf32>
    %c0_8 = arith.constant 0 : index
    %c0_9 = arith.constant 0 : index
    %16 = vector.load %arg8[%c0_8, %c0_9] : memref<8x128xf32, #tpu.memory_space<vmem>>, vector<8x128xf32>
    tpu.vector_store %arg8[%c0_8, %c0_9], %15 {strides = array<i32>} : memref<8x128xf32, #tpu.memory_space<vmem>>, vector<8x128xf32>,
    %c0_10 = arith.constant 0 : index
    %17 = memref.load %arg1[%c0_10] : memref<1xf32, #tpu.memory_space<smem>>
    %18 = vector.broadcast %17 : f32 to vector<8x128xf32>
    %19 = arith.mulf %18, %15 : vector<8x128xf32>
    %c0_11 = arith.constant 0 : index
    %c0_12 = arith.constant 0 : index
    %20 = vector.load %arg9[%c0_11, %c0_12] : memref<8x128xf32, #tpu.memory_space<vmem>>, vector<8x128xf32>
    tpu.vector_store %arg9[%c0_11, %c0_12], %19 {strides = array<i32>} : memref<8x128xf32, #tpu.memory_space<vmem>>, vector<8x128xf32>,
    %c0_13 = arith.constant 0 : index
    %c0_14 = arith.constant 0 : index
    %21 = vector.load %arg6[%c0_13, %c0_14] : memref<8x128xf32, #tpu.memory_space<vmem>>, vector<8x128xf32>
    %c0_15 = arith.constant 0 : index
    %c0_16 = arith.constant 0 : index
    %22 = vector.load %arg7[%c0_15, %c0_16] : memref<8x128xf32, #tpu.memory_space<vmem>>, vector<8x128xf32>
    %23 = arith.addf %21, %22 : vector<8x128xf32>
    %cst_17 = arith.constant dense<0xFF800000> : vector<8xf32>
    %24 = vector.multi_reduction <maximumf>, %23, %cst_17 [1] : vector<8x128xf32> to vector<8xf32>
    %25 = vector.shape_cast %24 : vector<8xf32> to vector<8x1xf32>
    %26 = vector.broadcast %25 : vector<8x1xf32> to vector<8x128xf32>
    %27 = arith.subf %23, %26 : vector<8x128xf32>
    %28 = math.exp %27 : vector<8x128xf32>
    %cst_18 = arith.constant dense<0.000000e+00> : vector<8xf32>
    %29 = vector.multi_reduction <add>, %28, %cst_18 [1] : vector<8x128xf32> to vector<8xf32>
    %30 = vector.shape_cast %29 : vector<8xf32> to vector<8x1xf32>
    %31 = tpu.reciprocal %30 : vector<8x1xf32> -> vector<8x1xf32>
    %32 = vector.broadcast %31 : vector<8x1xf32> to vector<8x128xf32>
    %33 = arith.mulf %28, %32 : vector<8x128xf32>
    %c0_19 = arith.constant 0 : index
    %c0_20 = arith.constant 0 : index
    %34 = vector.load %arg10[%c0_19, %c0_20] : memref<8x128xf32, #tpu.memory_space<vmem>>, vector<8x128xf32>
    tpu.vector_store %arg10[%c0_19, %c0_20], %33 {strides = array<i32>} : memref<8x128xf32, #tpu.memory_space<vmem>>, vector<8x128xf32>,
    return
  }
  func.func @transform_0(%arg0: i32) -> i32 {
    %c0_i32 = arith.constant 0 : i32
    %c0_i32_0 = arith.constant 0 : i32
    return %c0_i32 : i32
  }
  func.func @transform_1(%arg0: i32) -> (i32, i32) {
    %c0_i32 = arith.constant 0 : i32
    %c0_i32_0 = arith.constant 0 : i32
    return %arg0, %c0_i32 : i32, i32
  }
  func.func @transform_2(%arg0: i32) -> (i32, i32) {
    %c0_i32 = arith.constant 0 : i32
    %c0_i32_0 = arith.constant 0 : i32
    return %arg0, %c0_i32 : i32, i32
  }
  func.func @transform_3(%arg0: i32) -> (i32, i32) {
    %c0_i32 = arith.constant 0 : i32
    %c0_i32_0 = arith.constant 0 : i32
    return %arg0, %c0_i32 : i32, i32
  }
  func.func @transform_4(%arg0: i32) -> (i32, i32) {
    %c0_i32 = arith.constant 0 : i32
    %c0_i32_0 = arith.constant 0 : i32
    return %arg0, %c0_i32 : i32, i32
  }
  func.func @transform_5(%arg0: i32) -> (i32, i32) {
    %c0_i32 = arith.constant 0 : i32
    %c0_i32_0 = arith.constant 0 : i32
    return %arg0, %c0_i32 : i32, i32
  }
  func.func @transform_6(%arg0: i32) -> (i32, i32) {
    %c0_i32 = arith.constant 0 : i32
    %c0_i32_0 = arith.constant 0 : i32
    return %arg0, %c0_i32 : i32, i32
  }
  func.func @transform_7(%arg0: i32) -> (i32, i32) {
    %c0_i32 = arith.constant 0 : i32
    %c0_i32_0 = arith.constant 0 : i32
    return %arg0, %c0_i32 : i32, i32
  }
  func.func @transform_8(%arg0: i32) -> (i32, i32) {
    %c0_i32 = arith.constant 0 : i32
    %c0_i32_0 = arith.constant 0 : i32
    return %arg0, %c0_i32 : i32, i32
  }
  func.func @transform_9(%arg0: i32) -> (i32, i32) {
    %c0_i32 = arith.constant 0 : i32
    %c0_i32_0 = arith.constant 0 : i32
    return %arg0, %c0_i32 : i32, i32
  }
}

</mosaic_0001>

<bundles_post_ra>
// kernel: tpu_custom_call.1
= control target key start
LH: loop header
LB: loop body
LE: loop exit
PB: predicated region body
PF: predicated region fallthrough
CT: control target
= control target key end

     0   :  { %s1674_s0 = inlined_call_operand.<no memory space> [shape: f32[1], index: 0, kind: input, shape index: {}]   ;;  %s1675_s1 = inlined_call_operand.hbm [shape: f32[16,128], index: 1, kind: input, shape index: {}]   ;;  %s1676_s2 = inlined_call_operand.hbm [shape: f32[16,128], index: 2, kind: input, shape index: {}]   ;;  %s1677_s3 = inlined_call_operand.hbm [shape: f32[16,128], index: 3, kind: input, shape index: {}]   ;;  %s1678_s4 = inlined_call_operand.hbm [shape: f32[16,128], index: 4, kind: input, shape index: {}]   ;;  %s1679_s5 = inlined_call_operand.vmem [shape: f32[16,128], index: 5, kind: input, shape index: {}]   ;;  %s1680_s6 = inlined_call_operand.hbm [shape: f32[16,128], index: 6, kind: input, shape index: {}]   ;;  %s1681_s7 = inlined_call_operand.hbm [shape: f32[16,128], index: 7, kind: output, shape index: {0}]   ;;  %s1682_s8 = inlined_call_operand.hbm [shape: f32[16,128], index: 8, kind: output, shape index: {1}]   ;;  %s1683_s9 = inlined_call_operand.hbm [shape: f32[16,128], index: 9, kind: output, shape index: {2}]  }
   0x1   :  { %1700 = sst [smem:[#allocation27_spill]] %s1675_s1 }
   0x2   :  { %1701 = sst [smem:[#allocation28_spill]] %s1676_s2 }
   0x3   :  { %1702 = sst [smem:[#allocation29_spill]] %s1678_s4 }
   0x4   :  { %1703 = sst [smem:[#allocation30_spill]] %s1683_s9 }
   0x5   :  { %15 = sst [smem:[#allocation2]] %s1674_s0 }
   0x6   :  { %16 = vsyncpa [#allocation4], 0 }
   0x7   :  { %18 = vsyncpa [#allocation4 + $0x1], 0 }
   0x8   :  { %19 = vsyncpa [#allocation7], 0 }
   0x9   :  { %21 = vsyncpa [#allocation7 + $0x1], 0 }
   0xa   :  { %22 = vsyncpa [#allocation10], 0 }
   0xb   :  { %24 = vsyncpa [#allocation10 + $0x1], 0 }
   0xc   :  { %25 = vsyncpa [#allocation5], 0 }
   0xd   :  { %27 = vsyncpa [#allocation5 + $0x1], 0 }
   0xe   :  { %28 = vsyncpa [#allocation14], 0 }
   0xf   :  { %30 = vsyncpa [#allocation14 + $0x1], 0  ;;  %s1302_s11 = smov 0   ;;  %s1304_s12 = smov 0  }
  0x10   :  { %s1306_s13 = smov 0   ;;  %s1308_s14 = smov 0  }
  0x11 LB: > { %1704 = sst [smem:[#allocation21_spill]] %s1227_s11  ;;  %s1323_s0 = sadd.s32 4294967295, %s1239_s14   ;;  %s1239_s14 = sphi %s1308_s14, %s1735_s14   ;;  %s1235_s13 = sphi %s1306_s13, %s1737_s13   ;;  %s1231_s12 = sphi %s1304_s12, %s1739_s12   ;;  %s1227_s11 = sphi %s1302_s11, %s1738_s11  }
  0x12   : > { %1705 = sst [smem:[#allocation22_spill]] %s1235_s13  ;;  %s1684_s15 = sadd.s32 4294967294, %s1239_s14  }
  0x13   : > { %1706 = sst [smem:[#allocation23_spill]] %s1239_s14  ;;  %s1327_s16 = sadd.s32 1, %s1239_s14  }
  0x14   : > { %1707 = sst [smem:[#allocation24_spill]] %s1327_s16  ;;  %s64_s17 = sadd.s32 1, %s1235_s13 }
  0x15   : > { %s61_s18 = ssub.s32 %s1239_s14, %s1327_s16  ;;  %p71_p0 = scmp.ne.s32.totalorder %s1235_s13, %s1231_s12 }
  0x16   : > { %p62_p1 = scmp.eq.s32.totalorder %s61_s18, 0  ;;  %p72_p2 = scmp.eq.s32.totalorder %s1239_s14, 0 }
  0x17   : > { %p77_p3 = scmp.ne.s32.totalorder %s1231_s12, %s1227_s11  ;;  %p78_p4 = scmp.eq.s32.totalorder %s1323_s0, 0 }
  0x18   : > { %s1339_s19 = scalar_select %p62_p1, %s1235_s13, %s64_s17  }
  0x19   : > { %p73_p5 = por %p72_p2, %p71_p0  ;;  %p1341_p6 = por %p78_p4, %p77_p3 }
  0x1a   : > { %1708 = sst [smem:[#allocation25_spill]] %s1339_s19  ;;  %p231_p7 = scmp.eq.s32.totalorder %s1323_s0, 1 }
  0x1b   : > { %s1709_s20 = scalar_select %p1341_p6, 1, 0 }
  0x1c   : > { %p237_p8 = scmp.eq.s32.totalorder %s1684_s15, 1  ;;  %p913_p10 = scmp.lt.s32.totalorder %s1239_s14, 2 }
  0x1d   : > { %p1350_p11 = por %p231_p7, %p71_p0  ;;  %s1685_s23 = sand.u32 1, %s1235_s13  }
  0x1e   : > { %p1354_p12 = por %p237_p8, %p77_p3  ;;  %s1360_s24 = sshll.u32 %s1239_s14, 7 }
  0x1f   : > { %s1710_s21 = scalar_select %p1350_p11, 1, 0 }
  0x20   : > { %s1711_s22 = scalar_select %p1354_p12, 1, 0 }
  0x21   : > { %s1364_s25 = sshll.u32 %s1685_s23, 3  ;;  %p1366_p13 = pnand %p913_p10, %p73_p5 }
  0x22   : > { %1712 = sst [smem:[#allocation26_spill]] %s1711_s22  ;;  %s1688_s27 = sand.u32 1, %s1239_s14  }
  0x23   : > { %s1713_s26 = scalar_select %p1366_p13, 1, 0 }
  0x24   : > { %s1714_s2 = sld [smem:[#allocation28_spill]]  ;;  %s334_s10 = scalar_lea.vmem [#allocation6], %s1364_s25 }
  0x25   : > { %s341_s17 = sshll.u32 %s334_s10, 4  ;;  %s1383_s18 = scalar_lea.sflag [#allocation7], %s1688_s27  ;;  %s1378_s17 = int_to_ptr.vmem [resolvable:$true] %s341_s17 }
  0x26   : > { %p1389_p2 = pneg %p1366_p13 }
  0x2a   : > { %s1375_s30 = scalar_lea.hbm %s1714_s2, %s1360_s24  ;;  %s960_s10 = scalar_lea.hbm %s1714_s2, 256 }
  0x2b   : > { %s955_s15 = scalar_lea.hbm %s1375_s30, 128  ;;  %p961_p5 = scmp.lt.u32.totalorder %s1375_s30, %s1714_s2 }
  0x2c   : > { %p956_p1 = scmp.ne.s32.totalorder %s1375_s30, %s955_s15  ;;  %p962_p7 = scmp.lt.u32.totalorder %s960_s10, %s955_s15 }
  0x2d   : > { %p964_p10 = scmp.lt.u32.totalorder %s955_s15, %s1375_s30 }
  0x2e   : > { %p958_p3 = pnand %p1389_p2, %p956_p1  ;;  %p963_p8 = por %p962_p7, %p961_p5 }
  0x30   : > { %p959_p4 = pneg %p958_p3  ;;  %p965_p9 = por %p964_p10, %p963_p8 }
  0x32   : > { %p966_p0 = pnand %p965_p9, %p959_p4 }
  0x34   : > { %969 = shalt.err (!%p966_p0)
}
  0x35   : > { %s970_s27 = scalar_lea.vmem %s1378_s17, 128  ;;  %s1241_s28 = smov [#allocation6]  }
  0x36   : > { %p971_p1 = scmp.ne.s32.totalorder %s1378_s17, %s970_s27  ;;  %s975_s29 = sshll.u32 %s1241_s28, 4  ;;  %s976_s29 = int_to_ptr.vmem [resolvable:$false] %s975_s29 }
  0x37   : > { %s977_s16 = scalar_lea.vmem %s976_s29, 256  ;;  %p978_p11 = scmp.lt.s32.totalorder %s1378_s17, %s976_s29 }
  0x38   : > { %p973_p3 = pnand %p971_p1, %p1389_p2  ;;  %p979_p6 = scmp.lt.s32.totalorder %s977_s16, %s970_s27 }
  0x3a   : > { %p974_p12 = pneg %p973_p3  ;;  %p980_p5 = por %p979_p6, %p978_p11 }
  0x3c   : > { %p981_p7 = pnand %p980_p5, %p974_p12 }
  0x3e   : > { %984 = shalt.err (!%p981_p7)
}
  0x3f   : > { %893 = dma.hbm_to_vmem [thread:$0]  (!%p1366_p13), %s1375_s30, 128, %s1378_s17, %s1383_s18  }
  0x40   : > { %p407_p9 = scmp.lt.s32.totalorder %s1239_s14, 3  ;;  %s1716_s4 = sld [smem:[#allocation29_spill]] }
  0x41   : > { %p1717_p6 = scmp.ge.s32.totalorder %s1239_s14, 1  ;;  %s370_s28 = scalar_lea.vmem [#allocation9], %s1364_s25 }
  0x42   : > { %s377_s29 = sshll.u32 %s370_s28, 4  ;;  %s1719_s16 = sand.u32 1, %s1239_s14   ;;  %s378_s29 = int_to_ptr.vmem [resolvable:$true] %s377_s29 }
  0x43   : > { %p1422_p11 = pnand %p1717_p6, %p407_p9  ;;  %s1429_s30 = scalar_lea.sflag [#allocation10], %s1719_s16 }
  0x45   : > { %s1718_s10 = scalar_select %p1422_p11, 1, 0 }
  0x46   : > { %s1418_s27 = scalar_lea.hbm %s1716_s4, %s1360_s24  ;;  %s990_s2 = scalar_lea.hbm %s1716_s4, 256 }
  0x47   : > { %s985_s17 = scalar_lea.hbm %s1418_s27, 128  ;;  %p991_p8 = scmp.lt.u32.totalorder %s1418_s27, %s1716_s4 }
  0x48   : > { %p986_p12 = scmp.ne.s32.totalorder %s1418_s27, %s985_s17  ;;  %p992_p10 = scmp.lt.u32.totalorder %s990_s2, %s985_s17 }
  0x49   : > { %p994_p3 = scmp.lt.u32.totalorder %s985_s17, %s1418_s27 }
  0x4a   : > { %p988_p0 = pnand %p986_p12, %p1389_p2  ;;  %p993_p1 = por %p992_p10, %p991_p8 }
  0x4c   : > { %p989_p4 = pneg %p988_p0  ;;  %p995_p5 = por %p994_p3, %p993_p1 }
  0x4e   : > { %p996_p7 = pnand %p995_p5, %p989_p4 }
  0x50   : > { %999 = shalt.err (!%p996_p7)
}
  0x51   : > { %s1000_s28 = scalar_lea.vmem %s378_s29, 128  ;;  %s1242_s16 = smov [#allocation9]  }
  0x52   : > { %p1001_p9 = scmp.ne.s32.totalorder %s378_s29, %s1000_s28  ;;  %s1005_s14 = sshll.u32 %s1242_s16, 4  ;;  %s1006_s14 = int_to_ptr.vmem [resolvable:$false] %s1005_s14 }
  0x53   : > { %s1007_s15 = scalar_lea.vmem %s1006_s14, 256  ;;  %p1008_p0 = scmp.lt.s32.totalorder %s378_s29, %s1006_s14 }
  0x54   : > { %p1003_p6 = pnand %p1001_p9, %p1389_p2  ;;  %p1009_p11 = scmp.lt.s32.totalorder %s1007_s15, %s1000_s28 }
  0x56   : > { %p1004_p12 = pneg %p1003_p6  ;;  %p1010_p13 = por %p1009_p11, %p1008_p0 }
  0x58   : > { %p1011_p8 = pnand %p1010_p13, %p1004_p12 }
  0x5a   : > { %1014 = shalt.err (!%p1011_p8)
}
  0x5b   : > { %p1720_p10 = scmp.ne.s32.totalorder %s1713_s26, 0  ;;  %s1721_s1 = sld [smem:[#allocation27_spill]] }
  0x5c   : > { %s316_s14 = scalar_lea.vmem [#allocation3], %s1364_s25  ;;  %s1462_s16 = scalar_lea.hbm %s1677_s3, %s1360_s24 }
  0x5d   : > { %899 = dma.hbm_to_vmem [thread:$0]  (!%p1720_p10), %s1418_s27, 128, %s378_s29, %s1429_s30  }
  0x5e   : > { %s323_s17 = sshll.u32 %s316_s14, 4  ;;  %s1722_s15 = sand.u32 1, %s1235_s13   ;;  %s1456_s17 = int_to_ptr.vmem [resolvable:$true] %s323_s17 }
  0x5f   : > { %s313_s27 = scalar_lea.sflag [#allocation4], %s1722_s15 }
  0x61   : > { %s1453_s22 = scalar_lea.hbm %s1721_s1, %s1360_s24  ;;  %s1020_s4 = scalar_lea.hbm %s1721_s1, 256 }
  0x62   : > { %s1015_s29 = scalar_lea.hbm %s1453_s22, 128  ;;  %p1021_p1 = scmp.lt.u32.totalorder %s1453_s22, %s1721_s1 }
  0x63   : > { %p1016_p13 = scmp.ne.s32.totalorder %s1453_s22, %s1015_s29  ;;  %p1022_p3 = scmp.lt.u32.totalorder %s1020_s4, %s1015_s29 }
  0x64   : > { %p1024_p7 = scmp.lt.u32.totalorder %s1015_s29, %s1453_s22 }
  0x65   : > { %p1018_p11 = pnand %p1016_p13, %p1389_p2  ;;  %p1023_p5 = por %p1022_p3, %p1021_p1 }
  0x67   : > { %p1019_p4 = pneg %p1018_p11  ;;  %p1025_p9 = por %p1024_p7, %p1023_p5 }
  0x69   : > { %p1026_p6 = pnand %p1025_p9, %p1019_p4 }
  0x6b   : > { %1029 = shalt.err (!%p1026_p6)
}
  0x6c   : > { %s1030_s19 = scalar_lea.vmem %s1456_s17, 128  ;;  %s1243_s28 = smov [#allocation3]  }
  0x6d   : > { %p1031_p12 = scmp.ne.s32.totalorder %s1456_s17, %s1030_s19  ;;  %s1035_s15 = sshll.u32 %s1243_s28, 4  ;;  %s1036_s15 = int_to_ptr.vmem [resolvable:$false] %s1035_s15 }
  0x6e   : > { %s1037_s9 = scalar_lea.vmem %s1036_s15, 256  ;;  %p1038_p13 = scmp.lt.s32.totalorder %s1456_s17, %s1036_s15 }
  0x6f   : > { %p1033_p0 = pnand %p1031_p12, %p1389_p2  ;;  %p1039_p11 = scmp.lt.s32.totalorder %s1037_s9, %s1030_s19 }
  0x71   : > { %p1034_p8 = pneg %p1033_p0  ;;  %p1040_p1 = por %p1039_p11, %p1038_p13 }
  0x73   : > { %p1041_p3 = pnand %p1040_p1, %p1034_p8 }
  0x75   : > { %1044 = shalt.err (!%p1041_p3)
}
  0x76   : > { %890 = dma.hbm_to_vmem [thread:$0]  (!%p1720_p10), %s1453_s22, 128, %s1456_s17, %s313_s27  }
  0x77   : > { %s352_s4 = scalar_lea.vmem [#allocation8], %s1364_s25  ;;  %s1492_s14 = scalar_lea.hbm %s1680_s6, %s1360_s24 }
  0x78   : > { %s359_s29 = sshll.u32 %s352_s4, 4  ;;  %s1045_s19 = scalar_lea.hbm %s1462_s16, 128  ;;  %s360_s29 = int_to_ptr.vmem [resolvable:$true] %s359_s29 }
  0x79   : > { %p1046_p4 = scmp.ne.s32.totalorder %s1462_s16, %s1045_s19  ;;  %s1050_s9 = scalar_lea.hbm %s1677_s3, 256 }
  0x7a   : > { %p1051_p9 = scmp.lt.u32.totalorder %s1462_s16, %s1677_s3  ;;  %p1052_p6 = scmp.lt.u32.totalorder %s1050_s9, %s1045_s19 }
  0x7b   : > { %p1048_p5 = pnand %p1046_p4, %p1389_p2  ;;  %p1054_p0 = scmp.lt.u32.totalorder %s1045_s19, %s1462_s16 }
  0x7c   : > { %p1053_p12 = por %p1052_p6, %p1051_p9 }
  0x7d   : > { %p1049_p7 = pneg %p1048_p5 }
  0x7e   : > { %p1055_p8 = por %p1054_p0, %p1053_p12 }
  0x80   : > { %p1056_p13 = pnand %p1055_p8, %p1049_p7 }
  0x82   : > { %1059 = shalt.err (!%p1056_p13)
}
  0x83   : > { %s1060_s24 = scalar_lea.vmem %s360_s29, 128  ;;  %s1244_s22 = smov [#allocation8]  }
  0x84   : > { %p1061_p11 = scmp.ne.s32.totalorder %s360_s29, %s1060_s24  ;;  %s1065_s17 = sshll.u32 %s1244_s22, 4  ;;  %s1066_s17 = int_to_ptr.vmem [resolvable:$false] %s1065_s17 }
  0x85   : > { %s1067_s27 = scalar_lea.vmem %s1066_s17, 256  ;;  %p1068_p4 = scmp.lt.s32.totalorder %s360_s29, %s1066_s17 }
  0x86   : > { %p1063_p1 = pnand %p1061_p11, %p1389_p2  ;;  %p1069_p5 = scmp.lt.s32.totalorder %s1067_s27, %s1060_s24 }
  0x88   : > { %p1064_p3 = pneg %p1063_p1  ;;  %p1070_p10 = por %p1069_p5, %p1068_p4 }
  0x8a   : > { %p1071_p6 = pnand %p1070_p10, %p1064_p3 }
  0x8c   : > { %1074 = shalt.err (!%p1071_p6)
}
  0x8d   : > { %p1723_p9 = scmp.ne.s32.totalorder %s1713_s26, 0  ;;  %s395_s1 = scalar_lea.vmem [#allocation11], %s1364_s25 }
  0x8e   : > { %s402_s13 = sshll.u32 %s395_s1, 4  ;;  %s1075_s4 = scalar_lea.hbm %s1492_s14, 128  ;;  %s403_s13 = int_to_ptr.vmem [resolvable:$true] %s402_s13 }
  0x8f   : > { %896 = dma.hbm_to_vmem [thread:$0]  (!%p1723_p9), %s1462_s16, 128, %s360_s29, %s1383_s18  }
  0x90   : > { %p1076_p7 = scmp.ne.s32.totalorder %s1492_s14, %s1075_s4  ;;  %s1080_s19 = scalar_lea.hbm %s1680_s6, 256 }
  0x91   : > { %p1081_p0 = scmp.lt.u32.totalorder %s1492_s14, %s1680_s6  ;;  %p1082_p8 = scmp.lt.u32.totalorder %s1080_s19, %s1075_s4 }
  0x92   : > { %p1078_p12 = pnand %p1076_p7, %p1389_p2  ;;  %p1084_p11 = scmp.lt.u32.totalorder %s1075_s4, %s1492_s14 }
  0x93   : > { %p1083_p13 = por %p1082_p8, %p1081_p0 }
  0x94   : > { %p1079_p10 = pneg %p1078_p12 }
  0x95   : > { %p1085_p1 = por %p1084_p11, %p1083_p13 }
  0x97   : > { %p1086_p3 = pnand %p1085_p1, %p1079_p10 }
  0x99   : > { %1089 = shalt.err (!%p1086_p3)
}
  0x9a   : > { %s1090_s25 = scalar_lea.vmem %s403_s13, 128  ;;  %s1245_s18 = smov [#allocation11]  }
  0x9b   : > { %p1091_p4 = scmp.ne.s32.totalorder %s403_s13, %s1090_s25  ;;  %s1095_s16 = sshll.u32 %s1245_s18, 4  ;;  %s1096_s16 = int_to_ptr.vmem [resolvable:$false] %s1095_s16 }
  0x9c   : > { %s1097_s29 = scalar_lea.vmem %s1096_s16, 256  ;;  %p1098_p7 = scmp.lt.s32.totalorder %s403_s13, %s1096_s16 }
  0x9d   : > { %p1093_p5 = pnand %p1091_p4, %p1389_p2  ;;  %p1099_p12 = scmp.lt.s32.totalorder %s1097_s29, %s1090_s25 }
  0x9f   : > { %p1094_p6 = pneg %p1093_p5  ;;  %p1100_p9 = por %p1099_p12, %p1098_p7 }
  0xa1   : > { %p1101_p0 = pnand %p1100_p9, %p1094_p6 }
  0xa3   : > { %1104 = shalt.err (!%p1101_p0)
}
  0xa4   : > { %p1724_p8 = scmp.ne.s32.totalorder %s1713_s26, 0  ;;  %p1725_p10 = scmp.ne.s32.totalorder %s1718_s10, 0 }
  0xa5   : > { %s1534_s23 = sand.u32 (!%p1725_p10), 1, %s1231_s12   ;;  %p1726_p2 = scmp.ne.s32.totalorder (!%p1725_p10), %s1709_s20, 0 }
  0xa6   : > { %902 = dma.hbm_to_vmem [thread:$0]  (!%p1724_p8), %s1492_s14, 128, %s403_s13, %s1429_s30  }
  0xa7   : > { %411 = sbr.rel (%p1725_p10) target bundleno = 516 (0x204), region = 48  ;;  %s1537_s9 = sshll.u32 (!%p1725_p10), %s1534_s23, 3 }
  0xa8   : > { %s414_s24 = scalar_lea.sflag (!%p1725_p10), [#allocation4], %s1534_s23  ;;  %s417_s22 = scalar_lea.vmem (!%p1725_p10), [#allocation3], %s1537_s9 }
  0xae   : > { %1206 = dma.done.wait (%p1726_p2), %s414_s24, 128  }
  0xaf   : > { %1208 = vsyncadd (%p1726_p2), %s414_s24, 4294967168  ;;  %s1546_s26 = sand.u32 1, %s1323_s0   ;;  %s426_s30 = scalar_lea.vmem [#allocation6], %s1537_s9 }
  0xb0   : > { %s423_s10 = scalar_lea.sflag [#allocation7], %s1546_s26 }
  0xb1   : > { %1210 = dma.done.wait (%p1726_p2), %s423_s10, 256  }
  0xb2   : > { %1212 = vsyncadd (%p1726_p2), %s423_s10, 4294967040  ;;  %s435_s14 = scalar_lea.vmem [#allocation8], %s1537_s9  ;;  %s441_s17 = scalar_lea.sflag [#allocation10], %s1546_s26 }
  0xb3   : > { %s444_s27 = scalar_lea.vmem [#allocation9], %s1537_s9 }
  0xb4   : > { %1214 = dma.done.wait (%p1726_p2), %s441_s17, 256  }
  0xb5   : > { %1216 = vsyncadd (%p1726_p2), %s441_s17, 4294967040  ;;  %p522_p9 = scmp.lt.s32.totalorder %s1323_s0, 1  ;;  %s453_s19 = scalar_lea.vmem [#allocation11], %s1537_s9  ;;  %v529_v6 = vld [vmem:[%s444_s27] sm:$0xff]  ;;  %v526_v12 = vld [vmem:[%s417_s22] sm:$0xff] }
  0xb6   : > { %v548_v1 = vld [vmem:[%s453_s19] sm:$0xff]  ;;  %v527_v9 = vld [vmem:[%s426_s30] sm:$0xff]  ;;  %s543_s20 = sld [smem:[#allocation2]]  ;;  %s1573_s28 = sshll.u32 %s1323_s0, 7 }
  0xb7   : > { %s523_s1 = scalar_select %p522_p9, %s1323_s0, 1  ;;  %v528_v13 = vld [vmem:[%s435_s14] sm:$0xff] }
  0xb8   : > { %v533_v14 = vsub.f32 %v526_v12, %v528_v13  ;;  %s514_s15 = scalar_lea.vmem [#allocation13], %s1537_s9  ;;  %s1580_s16 = scalar_lea.hbm %s1682_s8, %s1573_s28 }
  0xb9   : > { %s861_s13 = sshll.u32 %s523_s1, 3  ;;  %s597_s29 = sshll.u32 %s514_s15, 4  ;;  %s598_s29 = int_to_ptr.vmem [resolvable:$true] %s597_s29 }
  0xba   : > { %s525_s11 = scalar_lea.vmem %s1679_s5, %s861_s13  ;;  %s566_s24 = scalar_lea.sflag [#allocation14], %s1546_s26 }
  0xbb   : > { %v547_v0 = vld [vmem:[%s525_s11] sm:$0xff]  ;;  %s1105_s22 = scalar_lea.vmem %s598_s29, 128  ;;  %p1727_p11 = scmp.ne.s32.totalorder %s1710_s21, 0 }
  0xbc   : > { %v549_v2 = vadd.f32 %v548_v1, %v547_v0  ;;  %v544_v23 = vstv %s543_s20  ;;  %p1106_p13 = scmp.ne.s32.totalorder %s598_s29, %s1105_s22  ;;  %s1246_s10 = smov [#allocation13]  }
  0xbd   : > { %s1109_s30 = sshll.u32 %s1246_s10, 4  ;;  %s1110_s30 = int_to_ptr.vmem [resolvable:$false] %s1109_s30 }
  0xbe   : > { %550 = vmax.xlane.f32.xlu0 %v549_v2  ;;  %p1107_p1 = pnand %p1106_p13, %p1727_p11  ;;  %s1111_s0 = scalar_lea.vmem %s1110_s30, 256 }
  0xbf   : > { %p1112_p4 = scmp.lt.s32.totalorder %s598_s29, %s1110_s30  ;;  %p1113_p5 = scmp.lt.s32.totalorder %s1111_s0, %s1105_s22 }
  0xc0   : > { %p1108_p3 = pneg %p1107_p1 }
  0xc1   : > { %p1114_p6 = por %p1113_p5, %p1112_p4 }
  0xc3   : > { %p1115_p7 = pnand %p1114_p6, %p1108_p3 }
 0x14b   : > { %v551_v3 = vpop.xlane.xlu0 %550 }
 0x14c   : > { %v552_v4 = vsub.f32 %v549_v2, %v551_v3 }
 0x14e   : > { %v553_v5 = vmul.f32 1.442695, %v552_v4 }
 0x150   : > { %947 = vpow2.f32 %v553_v5 }
 0x151   : > { %949 = vrcp.f32 %v529_v6 }
 0x15a   : > { %v1567_v7 = vpop.eup %947 }
 0x15b   : > { %555 = vadd.xlane.f32.xlu0 %v1567_v7  ;;  %v950_v8 = vpop.eup %949 }
 0x15c   : > { %v531_v10 = vmul.f32 %v950_v8, %v527_v9  ;;  %v534_v15 = vmul.f32 %v950_v8, %v533_v14 }
 0x15e   : > { %v532_v11 = vmul.f32 %v531_v10, %v531_v10  ;;  %v535_v16 = vmul.f32 %v534_v15, %v534_v15 }
 0x160   : > { %951 = vlog2.f32 %v532_v11  ;;  %v536_v17 = vadd.f32 %v535_v16, %v532_v11 }
 0x162   : > { %v862_v19 = vadd.f32 -1.0, %v536_v17 }
 0x16a   : > { %v952_v18 = vpop.eup %951 }
 0x16b   : > { %v539_v20 = vmul.f32 0.6931472, %v952_v18 }
 0x16d   : > { %v540_v21 = vsub.f32 %v862_v19, %v539_v20 }
 0x16f   : > { %v541_v22 = vmul.f32 0.5, %v540_v21 }
 0x171   : > { %v545_v24 = vmul.f32 %v544_v23, %v541_v22 }
 0x173   : > { %546 = vst [vmem:[%s514_s15] sm:$0xff] %v545_v24 }
 0x174   : > { %1118 = shalt.err (!%p1115_p7)
}
 0x175   : > { %s1119_s14 = scalar_lea.hbm %s1580_s16, 128  ;;  %s1123_s1 = scalar_lea.hbm %s1682_s8, 256 }
 0x176   : > { %p1120_p12 = scmp.ne.s32.totalorder %s1580_s16, %s1119_s14  ;;  %p1124_p10 = scmp.lt.u32.totalorder %s1580_s16, %s1682_s8 }
 0x177   : > { %p1125_p2 = scmp.lt.u32.totalorder %s1123_s1, %s1119_s14  ;;  %p1127_p13 = scmp.lt.u32.totalorder %s1119_s14, %s1580_s16 }
 0x178   : > { %p1121_p0 = pnand %p1120_p12, %p1727_p11 }
 0x179   : > { %p1126_p9 = por %p1125_p2, %p1124_p10 }
 0x17a   : > { %p1122_p8 = pneg %p1121_p0 }
 0x17b   : > { %p1128_p1 = por %p1127_p13, %p1126_p9 }
 0x17d   : > { %p1129_p3 = pnand %p1128_p1, %p1122_p8 }
 0x17f   : > { %1132 = shalt.err (!%p1129_p3)
}
 0x180   : > { %882 = dma.vmem_to_hbm [thread:$0]  (%p1727_p11), %s598_s29, 128, %s1580_s16, %s566_s24  }
 0x181   : > { %s507_s2 = scalar_lea.vmem [#allocation12], %s1537_s9  ;;  %s1607_s20 = scalar_lea.hbm %s1681_s7, %s1573_s28 }
 0x182   : > { %542 = vst [vmem:[%s507_s2] sm:$0xff] %v541_v22  ;;  %s584_s15 = sshll.u32 %s507_s2, 4  ;;  %s561_s25 = scalar_lea.sflag [#allocation5], %s1534_s23  ;;  %s585_s15 = int_to_ptr.vmem [resolvable:$true] %s584_s15 }
 0x183   : > { %s1133_s18 = scalar_lea.vmem %s585_s15, 128  ;;  %s1247_s22 = smov [#allocation12]  }
 0x184   : > { %p1134_p4 = scmp.ne.s32.totalorder %s585_s15, %s1133_s18  ;;  %s1137_s10 = sshll.u32 %s1247_s22, 4  ;;  %s1138_s10 = int_to_ptr.vmem [resolvable:$false] %s1137_s10 }
 0x185   : > { %s1139_s30 = scalar_lea.vmem %s1138_s10, 256  ;;  %p1140_p7 = scmp.lt.s32.totalorder %s585_s15, %s1138_s10 }
 0x186   : > { %p1135_p5 = pnand %p1134_p4, %p1727_p11  ;;  %p1141_p12 = scmp.lt.s32.totalorder %s1139_s30, %s1133_s18 }
 0x188   : > { %p1136_p6 = pneg %p1135_p5  ;;  %p1142_p0 = por %p1141_p12, %p1140_p7 }
 0x18a   : > { %p1143_p8 = pnand %p1142_p0, %p1136_p6 }
 0x18c   : > { %1146 = shalt.err (!%p1143_p8)
}
 0x18d   : > { %s1147_s23 = scalar_lea.hbm %s1607_s20, 128  ;;  %s1151_s0 = scalar_lea.hbm %s1681_s7, 256 }
 0x18e   : > { %p1148_p10 = scmp.ne.s32.totalorder %s1607_s20, %s1147_s23  ;;  %p1152_p13 = scmp.lt.u32.totalorder %s1607_s20, %s1681_s7 }
 0x18f   : > { %p1153_p1 = scmp.lt.u32.totalorder %s1151_s0, %s1147_s23  ;;  %p1155_p4 = scmp.lt.u32.totalorder %s1147_s23, %s1607_s20 }
 0x190   : > { %p1149_p2 = pnand %p1148_p10, %p1727_p11 }
 0x191   : > { %p1154_p3 = por %p1153_p1, %p1152_p13 }
 0x192   : > { %p1150_p9 = pneg %p1149_p2 }
 0x193   : > { %p1156_p5 = por %p1155_p4, %p1154_p3 }
 0x195   : > { %p1157_p6 = pnand %p1156_p5, %p1150_p9 }
 0x197   : > { %1160 = shalt.err (!%p1157_p6)
}
 0x198   : > { %881 = dma.vmem_to_hbm [thread:$0]  (%p1727_p11), %s585_s15, 128, %s1607_s20, %s561_s25  }
 0x199   : > { %s521_s27 = scalar_lea.vmem [#allocation15], %s1537_s9  ;;  %s1728_s2 = sld [smem:[#allocation30_spill]] }
 0x19a   : > { %s610_s1 = sshll.u32 %s521_s27, 4  ;;  %s1248_s20 = smov [#allocation15]   ;;  %s611_s1 = int_to_ptr.vmem [resolvable:$true] %s610_s1 }
 0x19b   : > { %s1161_s19 = scalar_lea.vmem %s611_s1, 128  ;;  %s1165_s15 = sshll.u32 %s1248_s20, 4  ;;  %s1166_s15 = int_to_ptr.vmem [resolvable:$false] %s1165_s15 }
 0x19c   : > { %p1162_p7 = scmp.ne.s32.totalorder %s611_s1, %s1161_s19  ;;  %s1167_s9 = scalar_lea.vmem %s1166_s15, 256 }
 0x19d   : > { %p1168_p8 = scmp.lt.s32.totalorder %s611_s1, %s1166_s15  ;;  %p1169_p10 = scmp.lt.s32.totalorder %s1167_s9, %s1161_s19 }
 0x19e   : > { %p1163_p12 = pnand %p1162_p7, %p1727_p11 }
 0x19f   : > { %s1633_s11 = scalar_lea.hbm %s1728_s2, %s1573_s28  ;;  %p1170_p2 = por %p1169_p10, %p1168_p8 }
 0x1a0   : > { %p1164_p0 = pneg %p1163_p12 }
 0x1a2   : > { %p1171_p9 = pnand %p1170_p2, %p1164_p0 }
 0x1e8   : > { %v556_v25 = vpop.xlane.xlu0 %555 }
 0x1e9   : > { %953 = vrcp.f32 %v556_v25 }
 0x1f3   : > { %v954_v26 = vpop.eup %953 }
 0x1f4   : > { %v558_v27 = vmul.f32 %v954_v26, %v1567_v7 }
 0x1f6   : > { %559 = vst [vmem:[%s521_s27] sm:$0xff] %v558_v27 }
 0x1f7   : > { %1174 = shalt.err (!%p1171_p9)
}
 0x1f8   : > { %s1175_s28 = scalar_lea.hbm %s1633_s11, 128  ;;  %s1179_s22 = scalar_lea.hbm %s1728_s2, 256 }
 0x1f9   : > { %p1176_p13 = scmp.ne.s32.totalorder %s1633_s11, %s1175_s28  ;;  %p1180_p4 = scmp.lt.u32.totalorder %s1633_s11, %s1728_s2 }
 0x1fa   : > { %p1181_p5 = scmp.lt.u32.totalorder %s1179_s22, %s1175_s28  ;;  %p1183_p7 = scmp.lt.u32.totalorder %s1175_s28, %s1633_s11 }
 0x1fb   : > { %p1177_p1 = pnand %p1176_p13, %p1727_p11 }
 0x1fc   : > { %p1182_p6 = por %p1181_p5, %p1180_p4 }
 0x1fd   : > { %p1178_p3 = pneg %p1177_p1 }
 0x1fe   : > { %p1184_p12 = por %p1183_p7, %p1182_p6 }
 0x200   : > { %p1185_p0 = pnand %p1184_p12, %p1178_p3 }
 0x202   : > { %1188 = shalt.err (!%p1185_p0)
}
 0x203   : > { %883 = dma.vmem_to_hbm [thread:$0]  (%p1727_p11), %s611_s1, 128, %s1633_s11, %s566_s24  }
 0x204 PF: > { %s1729_s23 = sld [smem:[#allocation21_spill]]  ;;  %s1730_s16 = sld [smem:[#allocation26_spill]] }
 0x205   : > { %s1731_s29 = sld [smem:[#allocation23_spill]] }
 0x20a   : > { %s622_s0 = sand.u32 1, %s1729_s23   ;;  %p1732_p8 = scmp.ne.s32.totalorder %s1730_s16, 0 }
 0x20b   : > { %p1733_p10 = scmp.ge.s32.totalorder %s1731_s29, 2  ;;  %s623_s14 = scalar_lea.sflag [#allocation5], %s622_s0 }
 0x20d   : > { %p904_p2 = pnand %p1733_p10, %p1732_p8 }
 0x20f   : > { %1218 = dma.done.wait (!%p904_p2), %s623_s14, 128  }
 0x210   : > { %1220 = vsyncadd (!%p904_p2), %s623_s14, 4294967168  ;;  %s1734_s17 = sadd.s32 4294967294, %s1731_s29  }
 0x211   : > { %s631_s27 = sand.u32 1, %s1734_s17  }
 0x212   : > { %s632_s13 = scalar_lea.sflag [#allocation14], %s631_s27 }
 0x213   : > { %1222 = dma.done.wait (!%p904_p2), %s632_s13, 256  }
 0x214   : > { %1224 = vsyncadd (!%p904_p2), %s632_s13, 4294967040  ;;  %s1735_s14 = sld [smem:[#allocation24_spill]]  ;;  %s1736_s21 = sld [smem:[#allocation22_spill]] }
 0x215   : > { %s1737_s13 = sld [smem:[#allocation25_spill]]  ;;  %s1738_s11 = smov %s1231_s12 }
 0x21a   : > { %p33_p11 = scmp.ge.s32.totalorder %s1735_s14, 4   ;;  %s1739_s12 = smov %s1736_s21 }
 0x21c   :  { %35 = sbr.rel (!%p33_p11) target bundleno = 17 (0x11), region = 176 }
 0x223   :  { %646 = vsyncpa [#allocation4], 1 }
 0x224   :  { %648 = vsyncpa [#allocation4 + $0x1], 1 }
 0x225   :  { %649 = vsyncpa [#allocation7], 1 }
 0x226   :  { %651 = vsyncpa [#allocation7 + $0x1], 1 }
 0x227   :  { %652 = vsyncpa [#allocation10], 1 }
 0x228   :  { %654 = vsyncpa [#allocation10 + $0x1], 1 }
 0x229   :  { %655 = vsyncpa [#allocation5], 1 }
 0x22a   :  { %657 = vsyncpa [#allocation5 + $0x1], 1 }
 0x22b   :  { %658 = vsyncpa [#allocation14], 1 }
 0x22c   :  { %660 = vsyncpa [#allocation14 + $0x1], 1 }

</bundles_post_ra>
